<compile_context>
chip_gen: v6e
topology: v6e:2x2x1
jax: 0.10.0
libtpu: 0.0.40
codegen_flags: <defaults>
</compile_context>

<pallas_src>
import functools

import jax
import jax.numpy as jnp
from jax import lax
from jax.experimental import pallas as pl
from jax.experimental.pallas import tpu as pltpu


def _ceil_to(x, m):
    return (x + m - 1) // m * m


def _vmem_capacity_bytes():
    """Physical VMEM per core (generation-aware), conservative fallback = 64 MiB."""
    try:
        info = pltpu.get_tpu_info()
        cap = int(getattr(info, "vmem_capacity_bytes", 0) or 0)
        if cap > 0:
            return cap
    except Exception:
        pass
    return 64 * 1024 * 1024  # v7x-sized conservative default


def _swish(y):
    # sigmoid(y) = 0.5 * tanh(y/2) + 0.5  ->  tanh on the EUP slot, no VPU divide.
    return y * (0.5 * jnp.tanh(0.5 * y) + 0.5)


def _choose_fold(cpg, dhw):
    """Pick k so the slab view (cpg*k, dhw//k) stays lane-dense (L % 128 == 0)
    and fills >= 8 sublanes when possible.  k=1 falls back to (cpg, dhw)."""
    best = 1
    for k in range(1, 9):
        if dhw % k == 0 and (dhw // k) % 128 == 0:
            best = k
            if cpg * k >= 8:
                break
    return best


def _pack_params(bias, gamma, beta, groups, rows_per_channel):
    """Pack (bias, gamma, beta) into one (3, G, R, 1) array (single resident DMA)."""
    def expand(p):
        p2 = p.reshape(groups, -1).astype(jnp.float32)          # (G, cpg)
        if rows_per_channel > 1:
            p2 = jnp.repeat(p2, rows_per_channel, axis=1)        # (G, R)
        return p2
    packed = jnp.stack([expand(bias), expand(gamma), expand(beta)], axis=0)
    return packed[..., None]                                     # (3, G, R, 1)


# ----------------------------------------------------------------------------
# Whole-(batch, group)-slab kernel: +bias -> swish -> groupnorm -> hardswish
# ----------------------------------------------------------------------------
def _slab_kernel(y_ref, p_ref, o_ref, *, eps, inv_count):
    # y_ref: (1, 1, R, L) one (batch, group) slab; p_ref: (3, G, R, 1) resident.
    g = pl.program_id(1)

    y = y_ref[...].astype(jnp.float32) + p_ref[0, g]             # conv bias folded in
    s = _swish(y)

    # One-pass stats (matches the reference CUDA kernel): var = E[s^2] - mean^2.
    mean = jnp.sum(s) * inv_count
    var = jnp.maximum(jnp.sum(s * s) * inv_count - mean * mean, 0.0)
    inv_std = lax.rsqrt(var + eps)

    a = p_ref[1, g] * inv_std                                    # gamma * inv_std  (R, 1)
    b = p_ref[2, g] - mean * a                                   # beta - mean * a
    scaled = s * a + b

    relu6 = jnp.clip(scaled + 3.0, 0.0, 6.0)
    o_ref[...] = (scaled * relu6 * (1.0 / 6.0)).astype(o_ref.dtype)


# ----------------------------------------------------------------------------
# Chunked two-pass kernels (large slabs; respects v7x's 64 MiB VMEM)
# ----------------------------------------------------------------------------
def _chunk_stats_kernel(y_ref, p_ref, mean_ref, istd_ref, acc_ref,
                        *, eps, inv_count, dhw, chunk):
    # y_ref: (1, 1, cpg, T) chunk of one (n, g) slab; acc_ref: SMEM (2,) f32.
    g = pl.program_id(1)
    c = pl.program_id(2)

    @pl.when(c == 0)
    def _():
        acc_ref[0] = jnp.float32(0.0)
        acc_ref[1] = jnp.float32(0.0)

    y = y_ref[...].astype(jnp.float32) + p_ref[0, g]
    s = _swish(y)
    # Mask the ragged final chunk (OOB lanes hold unspecified data).
    lane = lax.broadcasted_iota(jnp.int32, y.shape, 3)
    valid = (c * chunk + lane) < dhw
    s = jnp.where(valid, s, 0.0)

    acc_ref[0] += jnp.sum(s)
    acc_ref[1] += jnp.sum(s * s)

    @pl.when(c == pl.num_programs(2) - 1)
    def _():
        mean = acc_ref[0] * inv_count
        var = jnp.maximum(acc_ref[1] * inv_count - mean * mean, 0.0)
        istd = lax.rsqrt(var + eps)
        mean_ref[...] = jnp.full(mean_ref.shape, mean, jnp.float32)
        istd_ref[...] = jnp.full(istd_ref.shape, istd, jnp.float32)


def _chunk_apply_kernel(y_ref, p_ref, mean_ref, istd_ref, o_ref):
    g = pl.program_id(1)
    mean = mean_ref[0, 0, 0, :1]                                  # (1,)
    istd = istd_ref[0, 0, 0, :1]                                  # (1,)

    y = y_ref[...].astype(jnp.float32) + p_ref[0, g]
    s = _swish(y)                                                 # recompute: cheaper than storing

    a = p_ref[1, g] * istd                                        # (cpg, 1)
    b = p_ref[2, g] - mean * a
    scaled = s * a + b
    relu6 = jnp.clip(scaled + 3.0, 0.0, 6.0)
    o_ref[...] = (scaled * relu6 * (1.0 / 6.0)).astype(o_ref.dtype)


# ----------------------------------------------------------------------------
# Wrapper: path selection + pallas_call plumbing
# ----------------------------------------------------------------------------
def fused_bias_swish_groupnorm_hardswish(
    y, bias, gamma, beta, groups, eps, *,
    force_chunked=False, chunk_target_bytes=1 << 20):
    """y: (N, C, D, H, W) f32 conv output WITHOUT bias; bias/gamma/beta: (C,)."""
    N, C, D, H, W = y.shape
    assert C % groups == 0
    G = groups
    cpg = C // groups
    dhw = D * H * W
    eps = float(eps)

    cap = _vmem_capacity_bytes()

    def _maybe_vmem_limit(footprint, cp_kwargs):
        # Scoped VMEM default is 16 MiB (v5e) / 32 MiB (v6e, v7x).  Raise it
        # whenever we might exceed the smallest default; cap below physical.
        if footprint > 12 * 1024 * 1024:
            cp_kwargs["vmem_limit_bytes"] = int(
                min(max(footprint * 3 // 2, 32 * 1024 * 1024),
                    cap - 4 * 1024 * 1024))
        return cp_kwargs

    # ---- whole-(n, g)-slab footprint estimate (conservative: 8 slab buffers) --
    k = _choose_fold(cpg, dhw)
    R, L = cpg * k, dhw // k
    slab_pad = _ceil_to(R, 8) * _ceil_to(L, 128) * 4
    slab_params_pad = 3 * G * _ceil_to(R, 8) * 128 * 4
    slab_footprint = 8 * slab_pad + slab_params_pad + (2 << 20)

    if (not force_chunked) and slab_footprint <= cap - 8 * 1024 * 1024:
        # --- single-pass path: whole (n, g) slab resident in VMEM -------------
        y_r = y.reshape(N, G, R, L)                       # contiguous view, free
        params = _pack_params(bias, gamma, beta, G, k)    # (3, G, R, 1)
        cp_kwargs = _maybe_vmem_limit(
            slab_footprint, dict(dimension_semantics=("parallel", "parallel")))

        out = pl.pallas_call(
            functools.partial(_slab_kernel, eps=eps, inv_count=1.0 / (R * L)),
            out_shape=jax.ShapeDtypeStruct((N, G, R, L), y.dtype),
            grid_spec=pltpu.PrefetchScalarGridSpec(
                num_scalar_prefetch=0,
                grid=(N, G),
                in_specs=[
                    pl.BlockSpec((1, 1, R, L), lambda n, g: (n, g, 0, 0)),
                    # packed params: constant block index -> loaded once
                    pl.BlockSpec((3, G, R, 1), lambda n, g: (0, 0, 0, 0)),
                ],
                out_specs=pl.BlockSpec((1, 1, R, L), lambda n, g: (n, g, 0, 0)),
            ),
            input_output_aliases={0: 0},                  # conv output is dead after
            compiler_params=pltpu.CompilerParams(**cp_kwargs),
        )(y_r, params)
        return out.reshape(N, C, D, H, W)

    # --- chunked two-pass path ------------------------------------------------
    y_r = y.reshape(N, G, cpg, dhw)                       # contiguous view, free
    params = _pack_params(bias, gamma, beta, G, 1)        # (3, G, cpg, 1)

    t_elems = max(128, (int(chunk_target_bytes) // (4 * cpg)) // 128 * 128)
    T = min(_ceil_to(dhw, 128), t_elems)                  # lane-dense chunk
    n_chunks = -(-dhw // T)

    chunk_pad = _ceil_to(cpg, 8) * T * 4
    chunk_params_pad = 3 * G * _ceil_to(cpg, 8) * 128 * 4
    chunk_footprint = 8 * chunk_pad + chunk_params_pad + (2 << 20)
    cp = pltpu.CompilerParams(**_maybe_vmem_limit(
        chunk_footprint,
        dict(dimension_semantics=("parallel", "parallel", "arbitrary"))))

    stats_shape = jax.ShapeDtypeStruct((N, G, 1, 128), jnp.float32)
    mean_a, istd_a = pl.pallas_call(
        functools.partial(_chunk_stats_kernel, eps=eps,
                          inv_count=1.0 / (cpg * dhw), dhw=dhw, chunk=T),
        out_shape=(stats_shape, stats_shape),
        grid_spec=pltpu.PrefetchScalarGridSpec(
            num_scalar_prefetch=0,
            grid=(N, G, n_chunks),
            in_specs=[
                pl.BlockSpec((1, 1, cpg, T), lambda n, g, c: (n, g, 0, c)),
                pl.BlockSpec((3, G, cpg, 1), lambda n, g, c: (0, 0, 0, 0)),
            ],
            out_specs=[
                pl.BlockSpec((1, 1, 1, 128), lambda n, g, c: (n, g, 0, 0)),
                pl.BlockSpec((1, 1, 1, 128), lambda n, g, c: (n, g, 0, 0)),
            ],
            scratch_shapes=[pltpu.SMEM((2,), jnp.float32)],
        ),
        compiler_params=cp,
    )(y_r, params)

    out = pl.pallas_call(
        _chunk_apply_kernel,
        out_shape=jax.ShapeDtypeStruct((N, G, cpg, dhw), y.dtype),
        grid_spec=pltpu.PrefetchScalarGridSpec(
            num_scalar_prefetch=0,
            grid=(N, G, n_chunks),
            in_specs=[
                pl.BlockSpec((1, 1, cpg, T), lambda n, g, c: (n, g, 0, c)),
                pl.BlockSpec((3, G, cpg, 1), lambda n, g, c: (0, 0, 0, 0)),
                pl.BlockSpec((1, 1, 1, 128), lambda n, g, c: (n, g, 0, 0)),
                pl.BlockSpec((1, 1, 1, 128), lambda n, g, c: (n, g, 0, 0)),
            ],
            out_specs=pl.BlockSpec((1, 1, cpg, T), lambda n, g, c: (n, g, 0, c)),
        ),
        input_output_aliases={0: 0},                      # in-place over conv output
        compiler_params=cp,
    )(y_r, params, mean_a, istd_a)
    return out.reshape(N, C, D, H, W)


# ----------------------------------------------------------------------------
# ConvTranspose3d (NCDHW, PyTorch weight (Cin, Cout, kD, kH, kW)) — JAX glue.
# Bias is NOT added here; it is folded into the Pallas kernel.
# ----------------------------------------------------------------------------
def conv_transpose3d(x, weight, stride, padding):
    kk = weight.shape[2]
    w = jnp.flip(weight, axis=(2, 3, 4)).transpose(1, 0, 2, 3, 4)  # (Cout, Cin, k, k, k)
    pad = kk - 1 - padding
    return lax.conv_general_dilated(
        x, w,
        window_strides=(1, 1, 1),
        padding=[(pad, pad)] * 3,
        lhs_dilation=(stride, stride, stride),
        dimension_numbers=("NCDHW", "OIDHW", "NCDHW"),
    )


# ----------------------------------------------------------------------------
# Model forward
# ----------------------------------------------------------------------------
def model_forward(x, params, *, stride, padding, groups, eps,
                  force_chunked=False, chunk_target_bytes=1 << 20):
    y = conv_transpose3d(x, params["weight"], stride, padding)
    bias = params["bias"]
    if bias is None:
        bias = jnp.zeros((y.shape[1],), dtype=y.dtype)
    return fused_bias_swish_groupnorm_hardswish(
        y, bias, params["gamma"], params["beta"], groups, eps,
        force_chunked=force_chunked, chunk_target_bytes=chunk_target_bytes)


if __name__ == "__main__":
    def reference(x, params, stride, padding, groups, eps):
        y = conv_transpose3d(x, params["weight"], stride, padding)
        y = y + params["bias"].reshape(1, -1, 1, 1, 1)
        s = y * jax.nn.sigmoid(y)
        n = s.shape[0]
        s_g = s.reshape(n, groups, -1)
        mean = s_g.mean(-1, keepdims=True)
        var = ((s_g - mean) ** 2).mean(-1, keepdims=True)
        norm = ((s_g - mean) * lax.rsqrt(var + eps)).reshape(s.shape)
        scaled = (norm * params["gamma"].reshape(1, -1, 1, 1, 1)
                  + params["beta"].reshape(1, -1, 1, 1, 1))
        return scaled * jnp.clip(scaled + 3.0, 0.0, 6.0) / 6.0

    def make_case(key, in_c, out_c, ksz, n, sp):
        kx, kw, kb, kg, kbe = jax.random.split(key, 5)
        x = jax.random.normal(kx, (n, in_c, sp, sp, sp), jnp.float32)
        # ConvTranspose3d weight shape: (Cin, Cout, kD, kH, kW)
        w = 0.1 * jax.random.normal(kw, (in_c, out_c, ksz, ksz, ksz), jnp.float32)
        b = 0.1 * jax.random.normal(kb, (out_c,), jnp.float32)
        gm = 1.0 + 0.1 * jax.random.normal(kg, (out_c,), jnp.float32)
        bt = 0.1 * jax.random.normal(kbe, (out_c,), jnp.float32)
        return x, {"weight": w, "bias": b, "gamma": gm, "beta": bt}

    key = jax.random.PRNGKey(0)
    k1, k2 = jax.random.split(key)
    groups, eps = 4, 1e-5

    cases = [
        # 1) lane-dense whole-slab path (k=4, s=2 -> output spatial 8, dhw=512)
        (*make_case(k1, 4, 8, 4, 2, 4), 2, 1, {}),
        # 2) ragged-dhw whole-slab path (k=3, s=2 -> output spatial 7, dhw=343)
        (*make_case(k2, 3, 16, 3, 2, 4), 2, 1, {}),
        # 3) chunked two-pass path, forced, with a ragged final chunk
        (*make_case(k2, 3, 16, 3, 2, 4), 2, 1,
         {"force_chunked": True, "chunk_target_bytes": 2048}),
    ]

    for x, params, stride, padding, kwargs in cases:
        fwd = jax.jit(functools.partial(
            model_forward, stride=stride, padding=padding, groups=groups,
            eps=eps, **kwargs))
        out = jax.block_until_ready(fwd(x, params))
        ref = reference(x, params, stride, padding, groups, eps)
        assert out.shape == ref.shape, (out.shape, ref.shape)
        err = float(jnp.max(jnp.abs(out - ref)))
        assert err < 3e-4, err

    print("KERNEL_OK")
</pallas_src>

<mosaic_0001>
module attributes {stable_mosaic.version = 11 : i64} {
  func.func @_slab_kernel(%arg0: i32, %arg1: i32, %arg2: memref<1x1x8x128xf32, #tpu.memory_space<vmem>>, %arg3: memref<3x4x8x1xf32, #tpu.memory_space<vmem>>, %arg4: memref<1x1x8x128xf32, #tpu.memory_space<vmem>>) attributes {dimension_semantics = [#tpu.dimension_semantics<parallel>, #tpu.dimension_semantics<parallel>], iteration_bounds = array<i64: 2, 4>, scalar_prefetch = 0 : i64, scratch_operands = 0 : i64, tpu.core_type = #tpu.core_type<tc>, window_params = [{transform_indices = @transform_0, window_bounds = array<i64: 1, 1, 8, 128>}, {pipeline_mode = #tpu.pipeline_mode<synchronous>, transform_indices = @transform_1, window_bounds = array<i64: 3, 4, 8, 1>}, {transform_indices = @transform_2, window_bounds = array<i64: 1, 1, 8, 128>}]} {
    %c0 = arith.constant 0 : index
    %c0_0 = arith.constant 0 : index
    %c0_1 = arith.constant 0 : index
    %c0_2 = arith.constant 0 : index
    %0 = vector.load %arg2[%c0, %c0_0, %c0_1, %c0_2] : memref<1x1x8x128xf32, #tpu.memory_space<vmem>>, vector<1x1x8x128xf32>
    %c0_3 = arith.constant 0 : index
    %1 = arith.index_cast %arg1 : i32 to index
    %c0_4 = arith.constant 0 : index
    %c0_5 = arith.constant 0 : index
    %2 = vector.load %arg3[%c0_3, %1, %c0_4, %c0_5] : memref<3x4x8x1xf32, #tpu.memory_space<vmem>>, vector<1x1x8x1xf32>
    %3 = vector.shape_cast %2 : vector<1x1x8x1xf32> to vector<8x1xf32>
    %4 = vector.shape_cast %3 : vector<8x1xf32> to vector<1x1x8x1xf32>
    %5 = vector.broadcast %4 : vector<1x1x8x1xf32> to vector<1x1x8x128xf32>
    %6 = arith.addf %0, %5 : vector<1x1x8x128xf32>
    %cst = arith.constant 5.000000e-01 : f32
    %7 = vector.broadcast %cst : f32 to vector<1x1x8x128xf32>
    %8 = arith.mulf %7, %6 : vector<1x1x8x128xf32>
    %9 = math.tanh %8 : vector<1x1x8x128xf32>
    %cst_6 = arith.constant 5.000000e-01 : f32
    %10 = vector.broadcast %cst_6 : f32 to vector<1x1x8x128xf32>
    %11 = arith.mulf %10, %9 : vector<1x1x8x128xf32>
    %cst_7 = arith.constant 5.000000e-01 : f32
    %12 = vector.broadcast %cst_7 : f32 to vector<1x1x8x128xf32>
    %13 = arith.addf %11, %12 : vector<1x1x8x128xf32>
    %14 = arith.mulf %6, %13 : vector<1x1x8x128xf32>
    %15 = vector.shape_cast %14 : vector<1x1x8x128xf32> to vector<1x1x1x8x128xf32>
    %cst_8 = arith.constant dense<0.000000e+00> : vector<1xf32>
    %16 = vector.multi_reduction <add>, %15, %cst_8 [1, 2, 3, 4] : vector<1x1x1x8x128xf32> to vector<1xf32>
    %17 = vector.shape_cast %16 : vector<1xf32> to vector<1x1x1x1x1xf32>
    %18 = vector.extract %17[0, 0, 0, 0, 0] : f32 from vector<1x1x1x1x1xf32>
    %cst_9 = arith.constant 9.765625E-4 : f32
    %19 = arith.mulf %18, %cst_9 : f32
    %20 = arith.mulf %14, %14 : vector<1x1x8x128xf32>
    %21 = vector.shape_cast %20 : vector<1x1x8x128xf32> to vector<1x1x1x8x128xf32>
    %cst_10 = arith.constant dense<0.000000e+00> : vector<1xf32>
    %22 = vector.multi_reduction <add>, %21, %cst_10 [1, 2, 3, 4] : vector<1x1x1x8x128xf32> to vector<1xf32>
    %23 = vector.shape_cast %22 : vector<1xf32> to vector<1x1x1x1x1xf32>
    %24 = vector.extract %23[0, 0, 0, 0, 0] : f32 from vector<1x1x1x1x1xf32>
    %cst_11 = arith.constant 9.765625E-4 : f32
    %25 = arith.mulf %24, %cst_11 : f32
    %26 = arith.mulf %19, %19 : f32
    %27 = arith.subf %25, %26 : f32
    %cst_12 = arith.constant 0.000000e+00 : f32
    %28 = arith.maximumf %27, %cst_12 : f32
    %cst_13 = arith.constant 9.99999974E-6 : f32
    %29 = arith.addf %28, %cst_13 : f32
    %30 = math.rsqrt %29 : f32
    %c1 = arith.constant 1 : index
    %31 = arith.index_cast %arg1 : i32 to index
    %c0_14 = arith.constant 0 : index
    %c0_15 = arith.constant 0 : index
    %32 = vector.load %arg3[%c1, %31, %c0_14, %c0_15] : memref<3x4x8x1xf32, #tpu.memory_space<vmem>>, vector<1x1x8x1xf32>
    %33 = vector.shape_cast %32 : vector<1x1x8x1xf32> to vector<8x1xf32>
    %34 = vector.broadcast %30 : f32 to vector<8x1xf32>
    %35 = arith.mulf %33, %34 : vector<8x1xf32>
    %c2 = arith.constant 2 : index
    %36 = arith.index_cast %arg1 : i32 to index
    %c0_16 = arith.constant 0 : index
    %c0_17 = arith.constant 0 : index
    %37 = vector.load %arg3[%c2, %36, %c0_16, %c0_17] : memref<3x4x8x1xf32, #tpu.memory_space<vmem>>, vector<1x1x8x1xf32>
    %38 = vector.shape_cast %37 : vector<1x1x8x1xf32> to vector<8x1xf32>
    %39 = vector.broadcast %19 : f32 to vector<8x1xf32>
    %40 = arith.mulf %39, %35 : vector<8x1xf32>
    %41 = arith.subf %38, %40 : vector<8x1xf32>
    %42 = vector.shape_cast %35 : vector<8x1xf32> to vector<1x1x8x1xf32>
    %43 = vector.broadcast %42 : vector<1x1x8x1xf32> to vector<1x1x8x128xf32>
    %44 = arith.mulf %14, %43 : vector<1x1x8x128xf32>
    %45 = vector.shape_cast %41 : vector<8x1xf32> to vector<1x1x8x1xf32>
    %46 = vector.broadcast %45 : vector<1x1x8x1xf32> to vector<1x1x8x128xf32>
    %47 = arith.addf %44, %46 : vector<1x1x8x128xf32>
    %cst_18 = arith.constant 3.000000e+00 : f32
    %48 = vector.broadcast %cst_18 : f32 to vector<1x1x8x128xf32>
    %49 = arith.addf %47, %48 : vector<1x1x8x128xf32>
    %cst_19 = arith.constant 0.000000e+00 : f32
    %cst_20 = arith.constant 6.000000e+00 : f32
    %50 = vector.broadcast %cst_19 : f32 to vector<1x1x8x128xf32>
    %51 = arith.maximumf %50, %49 : vector<1x1x8x128xf32>
    %52 = vector.broadcast %cst_20 : f32 to vector<1x1x8x128xf32>
    %53 = arith.minimumf %52, %51 : vector<1x1x8x128xf32>
    %54 = arith.mulf %47, %53 : vector<1x1x8x128xf32>
    %cst_21 = arith.constant 0.166666672 : f32
    %55 = vector.broadcast %cst_21 : f32 to vector<1x1x8x128xf32>
    %56 = arith.mulf %54, %55 : vector<1x1x8x128xf32>
    %c0_22 = arith.constant 0 : index
    %c0_23 = arith.constant 0 : index
    %c0_24 = arith.constant 0 : index
    %c0_25 = arith.constant 0 : index
    %57 = vector.load %arg4[%c0_22, %c0_23, %c0_24, %c0_25] : memref<1x1x8x128xf32, #tpu.memory_space<vmem>>, vector<1x1x8x128xf32>
    tpu.vector_store %arg4[%c0_22, %c0_23, %c0_24, %c0_25], %56 {strides = array<i32>} : memref<1x1x8x128xf32, #tpu.memory_space<vmem>>, vector<1x1x8x128xf32>,
    return
  }
  func.func @transform_0(%arg0: i32, %arg1: i32) -> (i32, i32, i32, i32) {
    %c0_i32 = arith.constant 0 : i32
    %c0_i32_0 = arith.constant 0 : i32
    %c0_i32_1 = arith.constant 0 : i32
    return %arg0, %arg1, %c0_i32, %c0_i32_0 : i32, i32, i32, i32
  }
  func.func @transform_1(%arg0: i32, %arg1: i32) -> (i32, i32, i32, i32) {
    %c0_i32 = arith.constant 0 : i32
    %c0_i32_0 = arith.constant 0 : i32
    %c0_i32_1 = arith.constant 0 : i32
    %c0_i32_2 = arith.constant 0 : i32
    %c0_i32_3 = arith.constant 0 : i32
    return %c0_i32, %c0_i32_0, %c0_i32_1, %c0_i32_2 : i32, i32, i32, i32
  }
  func.func @transform_2(%arg0: i32, %arg1: i32) -> (i32, i32, i32, i32) {
    %c0_i32 = arith.constant 0 : i32
    %c0_i32_0 = arith.constant 0 : i32
    %c0_i32_1 = arith.constant 0 : i32
    return %arg0, %arg1, %c0_i32, %c0_i32_0 : i32, i32, i32, i32
  }
}

</mosaic_0001>

<bundles_post_ra>
// kernel: model_forward.1
= control target key start
LH: loop header
LB: loop body
LE: loop exit
PB: predicated region body
PF: predicated region fallthrough
CT: control target
= control target key end

     0   :  { %s468_s9 = smov 0   ;;  %s470_s10 = smov 0   ;;  %s534_s0 = inlined_call_operand.vmem [shape: f32[2,4,8,128], index: 0, kind: input, shape index: {}, may-alias: {0,2}]   ;;  %s535_s1 = inlined_call_operand.vmem [shape: f32[3,4,8,1], index: 1, kind: input, shape index: {}]   ;;  %s536_s2 = inlined_call_operand.vmem [shape: f32[2,4,8,128], index: 2, kind: output, shape index: {}, may-alias: {0,2}]  }
   0x1   :  { %s472_s11 = smov 0   ;;  %s474_s12 = smov 0  }
   0x2   :  { %s476_s13 = smov 0  }
   0x3 LB: > { %s21_s14 = sadd.s32 1, %s441_s11  ;;  %s24_s15 = sadd.s32 1, %s445_s12  ;;  %s449_s13 = sphi %s476_s13, %s12_s13   ;;  %s445_s12 = sphi %s474_s12, %s540_s12   ;;  %s441_s11 = sphi %s472_s11, %s539_s11   ;;  %s437_s10 = sphi %s470_s10, %s538_s10   ;;  %s433_s9 = sphi %s468_s9, %s537_s9  }
   0x4   : > { %p22_p0 = scmp.ge.s32.totalorder %s21_s14, 4  ;;  %p345_p1 = scmp.ge.s32.totalorder %s449_s13, 1 }
   0x5   : > { %p131_p2 = scmp.lt.s32.totalorder %s449_s13, 9 }
   0x6   : > { %s542_s14 = smov (%p22_p0, %s21_s14), 0  ;;  %s544_s15 = smov (!%p22_p0, %s24_s15), %s445_s12 }
   0x7   : > { %p132_p3 = pnand %p345_p1, %p131_p2  ;;  %p26_p4 = scmp.ge.s32.totalorder %s544_s15, 2 }
   0x8   : > { %s350_s16 = sshll.u32 (!%p132_p3), %s433_s9, 3  ;;  %p159_p5 = scmp.lt.s32.totalorder (!%p132_p3), %s437_s10, 1 }
   0x9   : > { %s546_s15 = smov (%p26_p4, %s544_s15), 0  ;;  %135 = sbr.rel (%p132_p3) target bundleno = 583 (0x247), region = 28 }
   0xa   : > { %s501_s19 = scalar_lea.vmem (!%p132_p3), %s535_s1, %s350_s16  ;;  %p161_p6 = scmp.lt.s32.totalorder (!%p132_p3), %s433_s9, 3 }
   0xb   : > { %s452_s4 = smov (!%p132_p3), 0.0  }
   0xe   : > { %v451_v0 = vmov 0   ;;  %v178_v1 = vld [vmem:[%s501_s19] sm:$0xff]  ;;  %s548_s10 = smov (!%p159_p5, %s437_s10), 1  ;;  %s550_s9 = smov (!%p161_p6, %s433_s9), 3 }
   0xf   : > { %405 = vset.pattern.permute.xlu0 %v451_v0  ;;  %406 = vset.pattern.permute.xlu1 %v451_v0  ;;  %s346_s20 = sshll.u32 %s548_s10, 2  ;;  %v352_v27 = vld [vmem:[%s501_s19 + $0x20] sm:$0xff] }
  0x10   : > { %181 = vperm.xlu0 %405, %v178_v1   ;;  %s504_s21 = sadd.s32 %s346_s20, %s550_s9  ;;  %v354_v31 = vld [vmem:[%s501_s19 + $0x40] sm:$0xff] }
  0x11   : > { %s347_s22 = sshll.u32 %s504_s21, 3 }
  0x12   : > { %s166_s25 = scalar_lea.vmem %s534_s0, %s347_s22  ;;  %s174_s10 = scalar_lea.vmem %s536_s2, %s347_s22 }
  0x13   : > { %v175_v2 = vld [vmem:[%s166_s25] sm:$0xff] }
  0x8b   : > { %v182_v3 = vpop.permute.xlu0 %181 }
  0x8c   : > { %v184_v4 = vadd.f32 %v182_v3, %v175_v2 }
  0x8e   : > { %v185_v5 = vmul.f32 0.5, %v184_v4 }
  0x90   : > { %407 = vtanh.f32 %v185_v5 }
  0x9d   : > { %v408_v6 = vpop.eup %407 }
  0x9e   : > { %v187_v7 = vmul.f32 0.5, %v408_v6 }
  0xa0   : > { %v188_v8 = vadd.f32 0.5, %v187_v7 }
  0xa2   : > { %v189_v9 = vmul.f32 %v188_v8, %v184_v4 }
  0xa4   : > { %190 = vadd.xlane.f32.xlu0 %v189_v9  ;;  %v200_v10 = vmul.f32 %v189_v9, %v189_v9 }
  0xa6   : > { %201 = vadd.xlane.f32.xlu1 %v200_v10 }
 0x12d   : > { %v191_v11 = vpop.xlane.xlu0 %190 }
 0x12e   : > { %v192_v12 = vrot.slane %v191_v11, 4 }
 0x12f   : > { %v202_v13 = vpop.xlane.xlu1 %201 }
 0x130   : > { %v193_v14 = vadd.f32 %v192_v12, %v191_v11  ;;  %v203_v15 = vrot.slane %v202_v13, 4 }
 0x132   : > { %v194_v16 = vrot.slane %v193_v14, 2  ;;  %v204_v17 = vadd.f32 %v203_v15, %v202_v13 }
 0x134   : > { %v205_v18 = vrot.slane %v204_v17, 2  ;;  %v195_v19 = vadd.f32 %v194_v16, %v193_v14 }
 0x136   : > { %v196_v20 = vrot.slane %v195_v19, 1  ;;  %v206_v21 = vadd.f32 %v205_v18, %v204_v17 }
 0x138   : > { %v197_v22 = vadd.f32 %v196_v20, %v195_v19  ;;  %v207_v23 = vrot.slane %v206_v21, 1 }
 0x13a   : > { %357 = vpush %v197_v22  ;;  %v208_v24 = vadd.f32 %v207_v23, %v206_v21 }
 0x13c   : > { %359 = vpush %v208_v24 }
 0x16b   : > { %s358_s26 = spop %357 }
 0x16c   : > { %s199_s27 = smul.f32 0.0009765625, %s358_s26 }
 0x16d   : > { %s360_s28 = spop %359 }
 0x16e   : > { %s211_s29 = smul.f32 %s199_s27, %s199_s27  ;;  %v226_v30 = vstv %s199_s27 }
 0x16f   : > { %s210_s30 = smul.f32 0.0009765625, %s360_s28 }
 0x171   : > { %s212_s3 = ssub.f32 %s210_s30, %s211_s29 }
 0x173   : > { %s213_s5 = smax.f32 %s452_s4, %s212_s3 }
 0x174   : > { %s214_s6 = sadd.f32 1e-05, %s213_s5 }
 0x176   : > { %v215_v25 = vstv %s214_s6 }
 0x177   : > { %409 = vrsqrt.f32 %v215_v25 }
 0x184   : > { %v410_v26 = vpop.eup %409 }
 0x185   : > { %361 = vpush %v410_v26 }
 0x1b6   : > { %s362_s7 = spop %361 }
 0x1b7   : > { %v221_v28 = vstv %s362_s7 }
 0x1b8   : > { %v222_v29 = vmul.f32 %v352_v27, %v221_v28 }
 0x1ba   : > { %v227_v32 = vmul.f32 %v226_v30, %v222_v29  ;;  %231 = vperm.xlu1 %406, %v222_v29  }
 0x1bc   : > { %v228_v33 = vsub.f32 %v354_v31, %v227_v32 }
 0x1be   : > { %237 = vperm.xlu1 %406, %v228_v33  }
 0x235   : > { %v232_v34 = vpop.permute.xlu1 %231 }
 0x236   : > { %v234_v35 = vmul.f32 %v232_v34, %v189_v9 }
 0x239   : > { %v238_v36 = vpop.permute.xlu1 %237 }
 0x23a   : > { %v240_v37 = vadd.f32 %v238_v36, %v234_v35 }
 0x23c   : > { %v241_v38 = vadd.f32 3.0, %v240_v37 }
 0x23e   : > { %v242_v39 = vmax.f32 %v241_v38, 0.0 }
 0x240   : > { %v243_v40 = vmin.f32 %v242_v39, 6.0 }
 0x242   : > { %v244_v41 = vmul.f32 %v243_v40, %v240_v37 }
 0x244   : > { %v245_v42 = vmul.f32 0.16666667, %v244_v41 }
 0x246   : > { %246 = vst [vmem:[%s174_s10] sm:$0xff] %v245_v42 }
 0x247 PF: > { %s12_s13 = sadd.s32 1, %s449_s13   ;;  %s537_s9 = smov %s441_s11 }
 0x248   : > { %p9_p7 = scmp.ge.s32.totalorder %s12_s13, 10   ;;  %s538_s10 = smov %s445_s12 }
 0x249   : > { %s539_s11 = smov %s542_s14  ;;  %s540_s12 = smov %s546_s15 }
 0x24a   :  { %11 = sbr.rel (!%p9_p7) target bundleno = 3 (0x3), region = 61 }

</bundles_post_ra>
